<compile_context>
chip_gen: v5e
topology: v5e:2x2
jax: 0.10.0
libtpu: 0.0.40
codegen_flags: <defaults>
</compile_context>

<pallas_src>
import functools

import jax
import jax.numpy as jnp
from jax.experimental import pallas as pl
from jax.experimental.pallas import tpu as pltpu


# ----------------------------- tiling helpers -----------------------------

def _round_up(x, m):
    return (x + m - 1) // m * m


def _pick_lane_tile(n, target):
    """Largest multiple of 256 (fallback 128) dividing n, capped at target.
    Returns n itself when n is small or not 128-aligned (full-axis block)."""
    if n <= 128 or n % 128 != 0:
        return n
    for step in (256, 128):
        if n % step != 0:
            continue
        t = max(step, (min(target, n) // step) * step)
        while n % t:
            t -= step
        return t
    return n


def _vmem_limit_bytes():
    cap = 64 * 1024 * 1024                      # conservative default (v7x per-TC)
    try:
        info = pltpu.get_tpu_info()
        cap = int(getattr(info, "vmem_capacity_bytes", cap)) or cap
    except Exception:
        pass
    # leave headroom for compiler scratch; cap well below the 128 MiB parts.
    return max(32 * 1024 * 1024, min((cap * 3) // 4, 100 * 1024 * 1024))


_VMEM_LIMIT = _vmem_limit_bytes()
_TILE_BUDGET = int(_VMEM_LIMIT * 0.8)


def _mm1_bytes(tm, k, tn, glu):
    wmult = 2 if glu else 1
    return (2 * tm * k * 2                      # x bf16, double buffered
            + 2 * k * tn * 2 * wmult            # bf16 weight stream(s)
            + 2 * tn * 4 * wmult                # f32 bias(es)
            + 2 * tm * tn * 2)                  # bf16 h output


def _mm2_bytes(tm, tk, n, out_bytes, split_k):
    b = (2 * tm * tk * 2                        # h bf16
         + 2 * tk * n * 2                       # w2 bf16
         + 2 * n * 4                            # bias
         + 2 * tm * n * out_bytes)              # output
    if split_k:
        b += tm * n * 4                         # f32 accumulator scratch
    return b


def _plan_tiles(m_tokens, dim, inner, dim_out, glu, out_bytes):
    tn1 = _pick_lane_tile(inner, 1024)          # first-matmul output-column tile
    tk2 = _pick_lane_tile(inner, 2048)          # second-matmul K tile
    split_k2 = tk2 != inner
    tm = 16
    for cand in (2048, 1024, 512, 256, 128, 64, 32, 16):
        if (_mm1_bytes(cand, dim, tn1, glu) <= _TILE_BUDGET
                and _mm2_bytes(cand, tk2, dim_out, out_bytes, split_k2)
                <= _TILE_BUDGET):
            tm = cand
            break
    # Keep >= 2 grid steps on the parallel M axis (v7x has 2 TCs) while bounding
    # padding overhead for small token counts.
    tm = min(tm, max(16, _round_up(pl.cdiv(m_tokens, 2), 16)))
    m_pad = _round_up(m_tokens, tm)
    return tm, m_pad, tn1, tk2


# ----------------------------- GELU (exact, via rational erf) ---------------

_SQRT1_2 = 0.7071067811865476


def _erf(x):
    # TODO(synk): lax.erf lowering in Mosaic is not guaranteed, so exact GELU is
    # built from an Abramowitz&Stegun 7.1.26 rational erf (max abs err ~1.5e-7)
    # using only exp/mul/add/select plus one EUP reciprocal.
    a1, a2, a3, a4, a5 = (0.254829592, -0.284496736, 1.421413741,
                          -1.453152027, 1.061405429)
    p = 0.3275911
    s = jnp.where(x >= 0.0, 1.0, -1.0)
    z = jnp.abs(x)
    t = pl.reciprocal(1.0 + p * z, approx=True)     # EUP slot, ~free
    poly = ((((a5 * t + a4) * t + a3) * t + a2) * t + a1) * t
    return s * (1.0 - poly * jnp.exp(-z * z))


def _gelu_exact(x):
    return 0.5 * x * (1.0 + _erf(x * _SQRT1_2))


# ----------------------------- Pallas kernels -----------------------------

def _linear_act_kernel(x_ref, w_ref, b_ref, o_ref, *, act):
    # Whole-K block: one MXU pass, bias (+GELU) fused into the epilogue.
    y = jnp.dot(x_ref[...], w_ref[...], preferred_element_type=jnp.float32)
    y = y + b_ref[...].astype(jnp.float32)
    if act == "gelu":
        y = _gelu_exact(y)
    o_ref[...] = y.astype(o_ref.dtype)


def _geglu_kernel(x_ref, wa_ref, ba_ref, wg_ref, bg_ref, o_ref):
    # Whole-K block; both GEGLU halves computed on the same resident x tile.
    xb = x_ref[...]
    a = jnp.dot(xb, wa_ref[...], preferred_element_type=jnp.float32)
    a = a + ba_ref[...].astype(jnp.float32)
    g = jnp.dot(xb, wg_ref[...], preferred_element_type=jnp.float32)
    g = g + bg_ref[...].astype(jnp.float32)
    o_ref[...] = (a * _gelu_exact(g)).astype(o_ref.dtype)


def _linear_splitk_kernel(x_ref, w_ref, b_ref, o_ref, acc_ref):
    # Full-width output; innermost K axis with f32 accumulator.
    @pl.when(pl.program_id(1) == 0)
    def _():
        acc_ref[...] = jnp.zeros_like(acc_ref)

    acc_ref[...] += jnp.dot(x_ref[...], w_ref[...],
                            preferred_element_type=jnp.float32)

    @pl.when(pl.program_id(1) == pl.num_programs(1) - 1)
    def _():
        o_ref[...] = (acc_ref[...] + b_ref[...].astype(jnp.float32)
                      ).astype(o_ref.dtype)


# ----------------------------- pallas_call wrappers -----------------------------

def _compiler_params(dims):
    return pltpu.CompilerParams(dimension_semantics=dims,
                                vmem_limit_bytes=_VMEM_LIMIT)


def _linear_full_k(x, w, b, *, tm, tn, act, out_dtype):
    """act(x @ w + b) with a single whole-K block; x DMA'd once per M tile."""
    m, k = x.shape
    _, n = w.shape
    grid = (m // tm, n // tn)
    return pl.pallas_call(
        functools.partial(_linear_act_kernel, act=act),
        out_shape=jax.ShapeDtypeStruct((m, n), out_dtype),
        grid_spec=pltpu.PrefetchScalarGridSpec(
            num_scalar_prefetch=0,
            grid=grid,
            in_specs=[
                pl.BlockSpec((tm, k), lambda i, j: (i, 0)),
                pl.BlockSpec((k, tn), lambda i, j: (0, j)),
                pl.BlockSpec((1, tn), lambda i, j: (0, j)),
            ],
            out_specs=pl.BlockSpec((tm, tn), lambda i, j: (i, j)),
        ),
        compiler_params=_compiler_params(("parallel", "parallel")),
    )(x, w, b.reshape(1, n))


def _linear_split_k(x, w, b, *, tm, tk, out_dtype):
    """x @ w + b with full output width and a split, innermost K axis."""
    m, k = x.shape
    _, n = w.shape
    grid = (m // tm, k // tk)
    return pl.pallas_call(
        _linear_splitk_kernel,
        out_shape=jax.ShapeDtypeStruct((m, n), out_dtype),
        grid_spec=pltpu.PrefetchScalarGridSpec(
            num_scalar_prefetch=0,
            grid=grid,
            in_specs=[
                pl.BlockSpec((tm, tk), lambda i, kk: (i, kk)),
                pl.BlockSpec((tk, n), lambda i, kk: (kk, 0)),
                pl.BlockSpec((1, n), lambda i, kk: (0, 0)),
            ],
            out_specs=pl.BlockSpec((tm, n), lambda i, kk: (i, 0)),
            scratch_shapes=[pltpu.VMEM((tm, n), jnp.float32)],
        ),
        compiler_params=_compiler_params(("parallel", "arbitrary")),
    )(x, w, b.reshape(1, n))


def _geglu(x, wa, ba, wg, bg, *, tm, tn, out_dtype):
    """a * GELU(gate), a = x@wa + ba, gate = x@wg + bg, fused in one kernel."""
    m, k = x.shape
    _, n = wa.shape
    grid = (m // tm, n // tn)
    return pl.pallas_call(
        _geglu_kernel,
        out_shape=jax.ShapeDtypeStruct((m, n), out_dtype),
        grid_spec=pltpu.PrefetchScalarGridSpec(
            num_scalar_prefetch=0,
            grid=grid,
            in_specs=[
                pl.BlockSpec((tm, k), lambda i, j: (i, 0)),
                pl.BlockSpec((k, tn), lambda i, j: (0, j)),
                pl.BlockSpec((1, tn), lambda i, j: (0, j)),
                pl.BlockSpec((k, tn), lambda i, j: (0, j)),
                pl.BlockSpec((1, tn), lambda i, j: (0, j)),
            ],
            out_specs=pl.BlockSpec((tm, tn), lambda i, j: (i, j)),
        ),
        compiler_params=_compiler_params(("parallel", "parallel")),
    )(x, wa, ba.reshape(1, n), wg, bg.reshape(1, n))


# ----------------------------- module forward -----------------------------

def feed_forward(x, params, *, glu=False):
    """Pallas forward of FeedForward(dim, dim_out, mult, glu, dropout=0.0).
    `params` must come from prepare_params() (weights already bf16)."""
    lead, dim = x.shape[:-1], x.shape[-1]
    out_dtype = x.dtype
    inner = params["w1a"].shape[1] if glu else params["w1"].shape[1]
    dim_out = params["w2"].shape[1]

    # bf16 activations end-to-end (cast folded into the reshape/pad copy).
    x2 = x.reshape(-1, dim).astype(jnp.bfloat16)
    m = x2.shape[0]
    tm, m_pad, tn1, tk2 = _plan_tiles(m, dim, inner, dim_out, glu,
                                      jnp.dtype(out_dtype).itemsize)
    if m_pad != m:
        x2 = jnp.pad(x2, ((0, m_pad - m), (0, 0)))

    if glu:
        h = _geglu(x2, params["w1a"], params["b1a"],
                   params["w1b"], params["b1b"],
                   tm=tm, tn=tn1, out_dtype=jnp.bfloat16)
    else:
        h = _linear_full_k(x2, params["w1"], params["b1"],
                           tm=tm, tn=tn1, act="gelu", out_dtype=jnp.bfloat16)

    if tk2 == inner:
        # inner fits in one K block: no accumulator needed at all.
        y = _linear_full_k(h, params["w2"], params["b2"],
                           tm=tm, tn=dim_out, act=None, out_dtype=out_dtype)
    else:
        y = _linear_split_k(h, params["w2"], params["b2"],
                            tm=tm, tk=tk2, out_dtype=out_dtype)

    if m_pad != m:
        y = y[:m]
    return y.reshape(lead + (dim_out,))


def prepare_params(params):
    """One-time weight cast to bf16 (biases kept f32). Do this outside the
    per-step jit so no per-call convert / extra weight HBM pass happens."""
    return {k: (v.astype(jnp.bfloat16) if k.startswith("w")
                else v.astype(jnp.float32))
            for k, v in params.items()}


# ----------------------------- reference & params -----------------------------

def feed_forward_ref(x, params, *, glu=False):
    if glu:
        a = x @ params["w1a"] + params["b1a"]
        g = x @ params["w1b"] + params["b1b"]
        h = a * jax.nn.gelu(g, approximate=False)
    else:
        h = jax.nn.gelu(x @ params["w1"] + params["b1"], approximate=False)
    return h @ params["w2"] + params["b2"]


def init_params(key, dim, mult=4, dim_out=None, glu=False, dtype=jnp.float32):
    dim_out = dim if dim_out is None else dim_out
    inner = int(dim * mult)
    ks = jax.random.split(key, 4)

    def lin(kw, kb, din, dout):
        bound = 1.0 / (din ** 0.5)            # PyTorch nn.Linear default init
        w = jax.random.uniform(kw, (din, dout), dtype, -bound, bound)
        b = jax.random.uniform(kb, (dout,), dtype, -bound, bound)
        return w, b

    p = {}
    if glu:
        w1, b1 = lin(ks[0], ks[1], dim, 2 * inner)   # GEGLU: Linear(dim, 2*inner)
        p["w1a"], p["b1a"] = w1[:, :inner], b1[:inner]
        p["w1b"], p["b1b"] = w1[:, inner:], b1[inner:]
    else:
        p["w1"], p["b1"] = lin(ks[0], ks[1], dim, inner)
    p["w2"], p["b2"] = lin(ks[2], ks[3], inner, dim_out)
    return p


# ----------------------------- main -----------------------------

if __name__ == "__main__":
    B, S, DIM, MULT = 2, 64, 64, 4          # inner_dim = 256, tokens M = 128
    key = jax.random.PRNGKey(0)
    kx, kp0, kp1 = jax.random.split(key, 3)
    x = jax.random.normal(kx, (B, S, DIM), dtype=jnp.float32)

    for glu, kp in ((False, kp0), (True, kp1)):
        params = init_params(kp, DIM, MULT, glu=glu)
        params_dev = prepare_params(params)          # one-time bf16 weight cast
        fwd = jax.jit(functools.partial(feed_forward, glu=glu))
        out = fwd(x, params_dev)
        jax.block_until_ready(out)
        ref = feed_forward_ref(x, params, glu=glu)
        assert out.shape == ref.shape and out.dtype == jnp.float32
        err = float(jnp.max(jnp.abs(out - ref)))
        scale = float(jnp.max(jnp.abs(ref)))
        # bf16 MXU operands/activations (f32 accumulate) -> bounded drift vs f32.
        assert err <= 2e-2 + 3e-2 * scale, (glu, err, scale)

    print("KERNEL_OK")
</pallas_src>

<mosaic_0001>
module attributes {stable_mosaic.version = 11 : i64} {
  func.func @_linear_act_kernel(%arg0: i32, %arg1: i32, %arg2: memref<64x256xbf16, #tpu.memory_space<vmem>>, %arg3: memref<256x64xbf16, #tpu.memory_space<vmem>>, %arg4: memref<1x64xf32, #tpu.memory_space<vmem>>, %arg5: memref<64x64xf32, #tpu.memory_space<vmem>>) attributes {dimension_semantics = [#tpu.dimension_semantics<parallel>, #tpu.dimension_semantics<parallel>], iteration_bounds = array<i64: 2, 1>, scalar_prefetch = 0 : i64, scratch_operands = 0 : i64, tpu.core_type = #tpu.core_type<tc>, window_params = [{transform_indices = @transform_0, window_bounds = array<i64: 64, 256>}, {transform_indices = @transform_1, window_bounds = array<i64: 256, 64>}, {transform_indices = @transform_2, window_bounds = array<i64: 1, 64>}, {transform_indices = @transform_3, window_bounds = array<i64: 64, 64>}]} {
    %c0 = arith.constant 0 : index
    %c0_0 = arith.constant 0 : index
    %0 = vector.load %arg2[%c0, %c0_0] : memref<64x256xbf16, #tpu.memory_space<vmem>>, vector<64x256xbf16>
    %c0_1 = arith.constant 0 : index
    %c0_2 = arith.constant 0 : index
    %1 = vector.load %arg3[%c0_1, %c0_2] : memref<256x64xbf16, #tpu.memory_space<vmem>>, vector<256x64xbf16>
    %cst = arith.constant dense<0.000000e+00> : vector<64x64xf32>
    %2 = tpu.matmul %0, %1, %cst {dimension_numbers = #tpu.dot_dimension_numbers<[1], [0], [0], [1], [0, 0, 1, 1], [], []>} : vector<64x256xbf16>, vector<256x64xbf16>, vector<64x64xf32> -> vector<64x64xf32>
    %c0_3 = arith.constant 0 : index
    %c0_4 = arith.constant 0 : index
    %3 = vector.load %arg4[%c0_3, %c0_4] : memref<1x64xf32, #tpu.memory_space<vmem>>, vector<1x64xf32>
    %4 = vector.broadcast %3 : vector<1x64xf32> to vector<64x64xf32>
    %5 = arith.addf %2, %4 : vector<64x64xf32>
    %c0_5 = arith.constant 0 : index
    %c0_6 = arith.constant 0 : index
    %6 = vector.load %arg5[%c0_5, %c0_6] : memref<64x64xf32, #tpu.memory_space<vmem>>, vector<64x64xf32>
    tpu.vector_store %arg5[%c0_5, %c0_6], %5 {strides = array<i32>} : memref<64x64xf32, #tpu.memory_space<vmem>>, vector<64x64xf32>,
    return
  }
  func.func @transform_0(%arg0: i32, %arg1: i32) -> (i32, i32) {
    %c0_i32 = arith.constant 0 : i32
    %c0_i32_0 = arith.constant 0 : i32
    return %arg0, %c0_i32 : i32, i32
  }
  func.func @transform_1(%arg0: i32, %arg1: i32) -> (i32, i32) {
    %c0_i32 = arith.constant 0 : i32
    %c0_i32_0 = arith.constant 0 : i32
    return %c0_i32, %arg1 : i32, i32
  }
  func.func @transform_2(%arg0: i32, %arg1: i32) -> (i32, i32) {
    %c0_i32 = arith.constant 0 : i32
    %c0_i32_0 = arith.constant 0 : i32
    return %c0_i32, %arg1 : i32, i32
  }
  func.func @transform_3(%arg0: i32, %arg1: i32) -> (i32, i32) {
    %c0_i32 = arith.constant 0 : i32
    return %arg0, %arg1 : i32, i32
  }
}

module attributes {stable_mosaic.version = 11 : i64} {
  func.func @_linear_act_kernel(%arg0: i32, %arg1: i32, %arg2: memref<64x64xbf16, #tpu.memory_space<vmem>>, %arg3: memref<64x256xbf16, #tpu.memory_space<vmem>>, %arg4: memref<1x256xf32, #tpu.memory_space<vmem>>, %arg5: memref<64x256xbf16, #tpu.memory_space<vmem>>) attributes {dimension_semantics = [#tpu.dimension_semantics<parallel>, #tpu.dimension_semantics<parallel>], iteration_bounds = array<i64: 2, 1>, scalar_prefetch = 0 : i64, scratch_operands = 0 : i64, tpu.core_type = #tpu.core_type<tc>, window_params = [{transform_indices = @transform_0, window_bounds = array<i64: 64, 64>}, {transform_indices = @transform_1, window_bounds = array<i64: 64, 256>}, {transform_indices = @transform_2, window_bounds = array<i64: 1, 256>}, {transform_indices = @transform_3, window_bounds = array<i64: 64, 256>}]} {
    %c0 = arith.constant 0 : index
    %c0_0 = arith.constant 0 : index
    %0 = vector.load %arg2[%c0, %c0_0] : memref<64x64xbf16, #tpu.memory_space<vmem>>, vector<64x64xbf16>
    %c0_1 = arith.constant 0 : index
    %c0_2 = arith.constant 0 : index
    %1 = vector.load %arg3[%c0_1, %c0_2] : memref<64x256xbf16, #tpu.memory_space<vmem>>, vector<64x256xbf16>
    %cst = arith.constant dense<0.000000e+00> : vector<64x256xf32>
    %2 = tpu.matmul %0, %1, %cst {dimension_numbers = #tpu.dot_dimension_numbers<[1], [0], [0], [1], [0, 0, 1, 1], [], []>} : vector<64x64xbf16>, vector<64x256xbf16>, vector<64x256xf32> -> vector<64x256xf32>
    %c0_3 = arith.constant 0 : index
    %c0_4 = arith.constant 0 : index
    %3 = vector.load %arg4[%c0_3, %c0_4] : memref<1x256xf32, #tpu.memory_space<vmem>>, vector<1x256xf32>
    %4 = vector.broadcast %3 : vector<1x256xf32> to vector<64x256xf32>
    %5 = arith.addf %2, %4 : vector<64x256xf32>
    %cst_5 = arith.constant 5.000000e-01 : f32
    %6 = vector.broadcast %cst_5 : f32 to vector<64x256xf32>
    %7 = arith.mulf %6, %5 : vector<64x256xf32>
    %cst_6 = arith.constant 0.707106769 : f32
    %8 = vector.broadcast %cst_6 : f32 to vector<64x256xf32>
    %9 = arith.mulf %5, %8 : vector<64x256xf32>
    %cst_7 = arith.constant 0.000000e+00 : f32
    %10 = vector.broadcast %cst_7 : f32 to vector<64x256xf32>
    %11 = arith.cmpf oge, %9, %10 : vector<64x256xf32>
    %cst_8 = arith.constant 1.000000e+00 : f32
    %cst_9 = arith.constant -1.000000e+00 : f32
    %12 = vector.broadcast %cst_8 : f32 to vector<64x256xf32>
    %13 = vector.broadcast %cst_9 : f32 to vector<64x256xf32>
    %14 = arith.select %11, %12, %13 : vector<64x256xi1>, vector<64x256xf32>
    %15 = math.absf %9 : vector<64x256xf32>
    %cst_10 = arith.constant 0.327591091 : f32
    %16 = vector.broadcast %cst_10 : f32 to vector<64x256xf32>
    %17 = arith.mulf %16, %15 : vector<64x256xf32>
    %cst_11 = arith.constant 1.000000e+00 : f32
    %18 = vector.broadcast %cst_11 : f32 to vector<64x256xf32>
    %19 = arith.addf %18, %17 : vector<64x256xf32>
    %20 = tpu.reciprocal %19 {approx = true} : vector<64x256xf32> -> vector<64x256xf32>
    %cst_12 = arith.constant 1.06140542 : f32
    %21 = vector.broadcast %cst_12 : f32 to vector<64x256xf32>
    %22 = arith.mulf %21, %20 : vector<64x256xf32>
    %cst_13 = arith.constant -1.45315206 : f32
    %23 = vector.broadcast %cst_13 : f32 to vector<64x256xf32>
    %24 = arith.addf %22, %23 : vector<64x256xf32>
    %25 = arith.mulf %24, %20 : vector<64x256xf32>
    %cst_14 = arith.constant 1.42141378 : f32
    %26 = vector.broadcast %cst_14 : f32 to vector<64x256xf32>
    %27 = arith.addf %25, %26 : vector<64x256xf32>
    %28 = arith.mulf %27, %20 : vector<64x256xf32>
    %cst_15 = arith.constant -0.284496725 : f32
    %29 = vector.broadcast %cst_15 : f32 to vector<64x256xf32>
    %30 = arith.addf %28, %29 : vector<64x256xf32>
    %31 = arith.mulf %30, %20 : vector<64x256xf32>
    %cst_16 = arith.constant 0.254829586 : f32
    %32 = vector.broadcast %cst_16 : f32 to vector<64x256xf32>
    %33 = arith.addf %31, %32 : vector<64x256xf32>
    %34 = arith.mulf %33, %20 : vector<64x256xf32>
    %cst_17 = arith.constant 0.000000e+00 : f32
    %35 = vector.broadcast %cst_17 : f32 to vector<64x256xf32>
    %36 = arith.subf %35, %15 : vector<64x256xf32>
    %37 = arith.mulf %36, %15 : vector<64x256xf32>
    %38 = math.exp %37 : vector<64x256xf32>
    %39 = arith.mulf %34, %38 : vector<64x256xf32>
    %cst_18 = arith.constant 1.000000e+00 : f32
    %40 = vector.broadcast %cst_18 : f32 to vector<64x256xf32>
    %41 = arith.subf %40, %39 : vector<64x256xf32>
    %42 = arith.mulf %14, %41 : vector<64x256xf32>
    %cst_19 = arith.constant 1.000000e+00 : f32
    %43 = vector.broadcast %cst_19 : f32 to vector<64x256xf32>
    %44 = arith.addf %43, %42 : vector<64x256xf32>
    %45 = arith.mulf %7, %44 : vector<64x256xf32>
    %46 = arith.truncf %45 : vector<64x256xf32> to vector<64x256xbf16>
    %c0_20 = arith.constant 0 : index
    %c0_21 = arith.constant 0 : index
    %47 = vector.load %arg5[%c0_20, %c0_21] : memref<64x256xbf16, #tpu.memory_space<vmem>>, vector<64x256xbf16>
    tpu.vector_store %arg5[%c0_20, %c0_21], %46 {strides = array<i32>} : memref<64x256xbf16, #tpu.memory_space<vmem>>, vector<64x256xbf16>,
    return
  }
  func.func @transform_0(%arg0: i32, %arg1: i32) -> (i32, i32) {
    %c0_i32 = arith.constant 0 : i32
    %c0_i32_0 = arith.constant 0 : i32
    return %arg0, %c0_i32 : i32, i32
  }
  func.func @transform_1(%arg0: i32, %arg1: i32) -> (i32, i32) {
    %c0_i32 = arith.constant 0 : i32
    %c0_i32_0 = arith.constant 0 : i32
    return %c0_i32, %arg1 : i32, i32
  }
  func.func @transform_2(%arg0: i32, %arg1: i32) -> (i32, i32) {
    %c0_i32 = arith.constant 0 : i32
    %c0_i32_0 = arith.constant 0 : i32
    return %c0_i32, %arg1 : i32, i32
  }
  func.func @transform_3(%arg0: i32, %arg1: i32) -> (i32, i32) {
    %c0_i32 = arith.constant 0 : i32
    return %arg0, %arg1 : i32, i32
  }
}

</mosaic_0001>

<bundles_post_ra>
// kernel: feed_forward.2
= control target key start
LH: loop header
LB: loop body
LE: loop exit
PB: predicated region body
PF: predicated region fallthrough
CT: control target
= control target key end

     0   :  { %s1162_s12 = smov 0   ;;  %s1164_s13 = smov 0   ;;  %s1566_s0 = inlined_call_operand.vmem [shape: bf16[128,64], index: 0, kind: input, shape index: {}]   ;;  %s1567_s1 = inlined_call_operand.vmem [shape: bf16[64,256], index: 1, kind: input, shape index: {}]   ;;  %s1568_s2 = inlined_call_operand.vmem [shape: f32[1,256], index: 2, kind: input, shape index: {}]   ;;  %s1569_s3 = inlined_call_operand.vmem [shape: bf16[128,256], index: 3, kind: output, shape index: {}]  }
   0x1   :  { %s1166_s14 = smov 0  }
   0x2 LB: > { %s25_s15 = sadd.s32 1, %s1135_s13  ;;  %p943_p0 = scmp.ge.s32.totalorder %s1139_s14, 1  ;;  %s1139_s14 = sphi %s1166_s14, %s13_s14   ;;  %s1135_s13 = sphi %s1164_s13, %s1571_s13   ;;  %s1131_s12 = sphi %s1162_s12, %s1570_s12  }
   0x3   : > { %p27_p1 = scmp.ge.s32.totalorder %s25_s15, 2  ;;  %p173_p2 = scmp.lt.s32.totalorder %s1139_s14, 3 }
   0x5   : > { %s1573_s15 = smov (%p27_p1, %s25_s15), 0  ;;  %p174_p3 = pnand %p943_p0, %p173_p2 }
   0x6   : > { %s944_s17 = sshll.u32 (!%p174_p3), %s1131_s12, 3 }
   0x7   : > { %177 = sbr.rel (%p174_p3) target bundleno = 291 (0x123), region = 32  ;;  %p212_p4 = scmp.lt.s32.totalorder (!%p174_p3), %s944_s17, 15 }
   0xc   : > { %v991_v0 = vld [vmem:[%s1567_s1 + $0x30] sm:$0xf]  ;;  %v1019_v1 = vld [vmem:[%s1567_s1 + $0x34] sm:$0xf0]  ;;  %v1018_v2 = vld [vmem:[%s1567_s1 + $0x34] sm:$0xf] }
   0xd   : > { %v992_v3 = vor.u32 %v1019_v1, %v991_v0  ;;  %v993_v4 = vld [vmem:[%s1567_s1 + $0x38] sm:$0xf0]  ;;  %v983_v5 = vld [vmem:[%s1567_s1 + $0x20] sm:$0xf]  ;;  %v1017_v6 = vld [vmem:[%s1567_s1 + $0x24] sm:$0xf0] }
   0xe   : > { %v996_v7 = vor.u32 %v1018_v2, %v993_v4  ;;  %v1016_v8 = vld [vmem:[%s1567_s1 + $0x24] sm:$0xf]  ;;  %v985_v9 = vld [vmem:[%s1567_s1 + $0x28] sm:$0xf0]  ;;  %v984_v10 = vor.u32 %v1017_v6, %v983_v5  ;;  %v975_v12 = vld [vmem:[%s1567_s1 + $0x10] sm:$0xf] }
   0xf   : > { %340 = vmatpush.bf16.msra.mxu0 %v992_v3  ;;  %1020 = vmatpush.bf16.msra.mxu2 %v992_v3  ;;  %v988_v11 = vor.u32 %v1016_v8, %v985_v9  ;;  %v1015_v13 = vld [vmem:[%s1567_s1 + $0x14] sm:$0xf0]  ;;  %v1014_v14 = vld [vmem:[%s1567_s1 + $0x14] sm:$0xf]  ;;  %v977_v15 = vld [vmem:[%s1567_s1 + $0x18] sm:$0xf0] }
  0x10   : > { %369 = vmatpush.bf16.msra.mxu1 %v996_v7  ;;  %1024 = vmatpush.bf16.msra.mxu3 %v996_v7  ;;  %v976_v16 = vor.u32 %v1015_v13, %v975_v12  ;;  %v980_v17 = vor.u32 %v1014_v14, %v977_v15  ;;  %v967_v18 = vld [vmem:[%s1567_s1] sm:$0xf]  ;;  %v1013_v19 = vld [vmem:[%s1567_s1 + $0x4] sm:$0xf0]  ;;  %s1575_s17 = smov (!%p212_p4, %s944_s17), 15  ;;  %vm323_vm0 = vcmask 523264  }
  0x11   : > { %v1012_v20 = vld [vmem:[%s1567_s1 + $0x4] sm:$0xf]  ;;  %v969_v21 = vld [vmem:[%s1567_s1 + $0x8] sm:$0xf0]  ;;  %s945_s25 = sshll.u32 %s1575_s17, 2  ;;  %v968_v22 = vor.u32 %v1013_v19, %v967_v18  ;;  %v1141_v3 = vmov -1.0  }
  0x12   : > { %s215_s28 = scalar_lea.vmem %s1566_s0, %s945_s25  ;;  %v972_v23 = vor.u32 %v1012_v20, %v969_v21  ;;  %v257_v28 = vld [vmem:[%s1568_s2] sm:$0x3]  ;;  %s1007_s4 = sshll.u32 %s1575_s17, 3 }
  0x13   : > { %341 = vmatpush.bf16.msra.mxu0 %v984_v10  ;;  %1021 = vmatpush.bf16.msra.mxu2 %v984_v10  ;;  %v1008_v24 = vld [vmem:[%s215_s28] sm:$0xff]  ;;  %v1010_v25 = vld [vmem:[%s215_s28 + $0x10] sm:$0xff]  ;;  %v1009_v26 = vld [vmem:[%s215_s28 + $0x8] sm:$0xff]  ;;  %v1240_v29 = vperm.slane %v257_v28, 0  ;;  %v1242_v30 = vperm.slane %v257_v28, 1  ;;  %s1357_s7 = scalar_lea.vmem %s1569_s3, %s1007_s4 }
  0x14   : > { %370 = vmatpush.bf16.msra.mxu1 %v988_v11  ;;  %1025 = vmatpush.bf16.msra.mxu3 %v988_v11  ;;  %v1011_v27 = vld [vmem:[%s215_s28 + $0x18] sm:$0xff] }
  0x17   : > { %342 = vmatpush.bf16.msra.mxu0 %v976_v16  ;;  %1022 = vmatpush.bf16.msra.mxu2 %v976_v16 }
  0x18   : > { %371 = vmatpush.bf16.msra.mxu1 %v980_v17  ;;  %1026 = vmatpush.bf16.msra.mxu3 %v980_v17 }
  0x1b   : > { %343 = vmatpush.bf16.msra.mxu0 %v968_v22  ;;  %1023 = vmatpush.bf16.msra.mxu2 %v968_v22 }
  0x1c   : > { %372 = vmatpush.bf16.msra.mxu1 %v972_v23  ;;  %1027 = vmatpush.bf16.msra.mxu3 %v972_v23 }
  0x1e   : > { %997 = vmatmul.msk.bf16.vlgmr.msra.gmra.mxu0 %vm323_vm0, %v1008_v24  ;;  %999 = vmatmul.msk.bf16.vlgmr.msra.gmra.mxu2 %vm323_vm0, %v1010_v25 }
  0x1f   : > { %1001 = vmatmul.msk.bf16.vlgmr.msra.gmra.mxu1 %vm323_vm0, %v1008_v24  ;;  %1003 = vmatmul.msk.bf16.vlgmr.msra.gmra.mxu3 %vm323_vm0, %v1010_v25 }
  0x2e   : > { %998 = vmatmul.msk.bf16.gmra.mxu0 %vm323_vm0, %v1009_v26  ;;  %1000 = vmatmul.msk.bf16.gmra.mxu2 %vm323_vm0, %v1011_v27 }
  0x2f   : > { %1002 = vmatmul.msk.bf16.gmra.mxu1 %vm323_vm0, %v1009_v26  ;;  %1004 = vmatmul.msk.bf16.gmra.mxu3 %vm323_vm0, %v1011_v27 }
  0x9b   : > { %v345_v31 = vpop.f32.mrf.mxu0 }
  0x9c   : > { %v346_v32 = vadd.f32 %v345_v31, %v1240_v29  ;;  %v374_v33 = vpop.f32.mrf.mxu1 }
  0x9d   : > { %v375_v34 = vadd.f32 %v374_v33, %v1242_v30 }
  0x9e   : > { %v410_v35 = vmul.f32 0.70710677, %v346_v32  ;;  %v1260_v58 = vmul.f32 0.5, %v346_v32 }
  0x9f   : > { %v411_v36 = vmul.f32 0.70710677, %v375_v34  ;;  %v1262_v59 = vmul.f32 0.5, %v375_v34 }
  0xa0   : > { %v458_v37 = vand.u32 2147483647, %v410_v35  ;;  %vm426_vm1 = vcmp.ge.f32.partialorder %v410_v35, 0.0 }
  0xa1   : > { %v459_v38 = vand.u32 2147483647, %v411_v36  ;;  %v355_v39 = vpop.f32.mrf.mxu2  ;;  %vm427_vm2 = vcmp.ge.f32.partialorder %v411_v36, 0.0  ;;  %v1271_v4 = vsel %vm426_vm1, 1.0, %v1141_v3 }
  0xa2   : > { %v474_v40 = vmul.f32 0.3275911, %v458_v37  ;;  %v356_v41 = vadd.f32 %v355_v39, %v1240_v29  ;;  %v384_v42 = vpop.f32.mrf.mxu3  ;;  %v666_v52 = vsub.f32 0.0, %v458_v37  ;;  %v1274_v5 = vsel %vm427_vm2, 1.0, %v1141_v3 }
  0xa3   : > { %v475_v43 = vmul.f32 0.3275911, %v459_v38  ;;  %v1248_v44 = vadd.f32 %v384_v42, %v1242_v30  ;;  %v347_v50 = vpop.f32.mrf.mxu0  ;;  %v667_v53 = vsub.f32 0.0, %v459_v38 }
  0xa4   : > { %v490_v45 = vadd.f32 1.0, %v474_v40  ;;  %v418_v46 = vmul.f32 0.70710677, %v356_v41  ;;  %v376_v51 = vpop.f32.mrf.mxu1  ;;  %v1255_v56 = vadd.f32 %v347_v50, %v1240_v29  ;;  %v682_v62 = vmul.f32 %v666_v52, %v458_v37 }
  0xa5   : > { %v491_v47 = vadd.f32 1.0, %v475_v43  ;;  %v1251_v48 = vmul.f32 0.70710677, %v1248_v44  ;;  %v1258_v57 = vadd.f32 %v376_v51, %v1242_v30  ;;  %v683_v63 = vmul.f32 %v667_v53, %v459_v38 }
  0xa6   : > { %1053 = vrcp.f32 %v490_v45  ;;  %v466_v49 = vand.u32 2147483647, %v418_v46  ;;  %v1265_v1 = vmul.f32 0.70710677, %v1255_v56  ;;  %v1276_v6 = vmul.f32 0.5, %v356_v41 }
  0xa7   : > { %1055 = vrcp.f32 %v491_v47  ;;  %v467_v55 = vand.u32 2147483647, %v1251_v48  ;;  %vm434_vm3 = vcmp.ge.f32.partialorder %v418_v46, 0.0  ;;  %v1282_v10 = vmul.f32 0.70710677, %v1258_v57 }
  0xa8   : > { %v482_v54 = vmul.f32 0.3275911, %v466_v49  ;;  %v674_v61 = vsub.f32 0.0, %v466_v49  ;;  %v460_v14 = vand.u32 2147483647, %v1265_v1  ;;  %v1287_v20 = vsel %vm434_vm3, 1.0, %v1141_v3 }
  0xa9   : > { %v483_v0 = vmul.f32 0.3275911, %v467_v55  ;;  %v675_v13 = vsub.f32 0.0, %v467_v55  ;;  %v357_v15 = vpop.f32.mrf.mxu2  ;;  %v698_v17 = vmul.f32 1.442695, %v682_v62  ;;  %vm435_vm4 = vcmp.ge.f32.partialorder %v1251_v48, 0.0 }
  0xaa   : > { %v498_v60 = vadd.f32 1.0, %v482_v54  ;;  %v690_v12 = vmul.f32 %v674_v61, %v466_v49  ;;  %v700_v18 = vmul.f32 1.442695, %v683_v63  ;;  %v476_v21 = vmul.f32 0.3275911, %v460_v14  ;;  %v386_v52 = vpop.f32.mrf.mxu3 }
  0xab   : > { %v499_v9 = vadd.f32 1.0, %v483_v0  ;;  %v668_v22 = vsub.f32 0.0, %v460_v14  ;;  %v461_v24 = vand.u32 2147483647, %v1282_v10  ;;  %v1293_v25 = vadd.f32 %v357_v15, %v1240_v29 }
  0xac   : > { %v1267_v2 = vpop.eup %1053  ;;  %1057 = vrcp.f32 %v498_v60  ;;  %v714_v28 = vmul.f32 1.442695, %v690_v12  ;;  %v691_v31 = vmul.f32 %v675_v13, %v467_v55  ;;  %v492_v32 = vadd.f32 1.0, %v476_v21 }
  0xad   : > { %v1278_v7 = vpop.eup %1055  ;;  %v522_v8 = vmul.f32 1.0614054, %v1267_v2  ;;  %1059 = vrcp.f32 %v499_v9  ;;  %v477_v35 = vmul.f32 0.3275911, %v461_v24  ;;  %v684_v37 = vmul.f32 %v668_v22, %v460_v14 }
  0xae   : > { %v523_v11 = vmul.f32 1.0614054, %v1278_v7  ;;  %1061 = vpow2.f32 %v698_v17  ;;  %v669_v38 = vsub.f32 0.0, %v461_v24  ;;  %v1303_v43 = vmul.f32 0.70710677, %v1293_v25 }
  0xaf   : > { %v538_v16 = vadd.f32 -1.4531521, %v522_v8  ;;  %1063 = vrcp.f32 %v492_v32  ;;  %v493_v42 = vadd.f32 1.0, %v477_v35  ;;  %v716_v47 = vmul.f32 1.442695, %v691_v31 }
  0xb0   : > { %v539_v19 = vadd.f32 -1.4531521, %v523_v11  ;;  %1065 = vpow2.f32 %v700_v18  ;;  %v1311_v51 = vsel %vm435_vm4, 1.0, %v1141_v3  ;;  %v702_v55 = vmul.f32 1.442695, %v684_v37 }
  0xb1   : > { %v554_v23 = vmul.f32 %v1267_v2, %v538_v16  ;;  %1067 = vrcp.f32 %v493_v42  ;;  %v685_v60 = vmul.f32 %v669_v38, %v461_v24  ;;  %v468_v0 = vand.u32 2147483647, %v1303_v43 }
  0xb2   : > { %v1295_v26 = vpop.eup %1057  ;;  %v555_v27 = vmul.f32 %v1278_v7, %v539_v19  ;;  %1069 = vpow2.f32 %v714_v28  ;;  %v1320_v11 = vadd.f32 %v386_v52, %v1242_v30  ;;  %vm428_vm5 = vcmp.ge.f32.partialorder %v1265_v1, 0.0 }
  0xb3   : > { %v570_v33 = vadd.f32 1.4214138, %v554_v23  ;;  %v530_v34 = vmul.f32 1.0614054, %v1295_v26  ;;  %v1299_v39 = vpop.eup %1059  ;;  %1071 = vpow2.f32 %v716_v47  ;;  %v484_v15 = vmul.f32 0.3275911, %v468_v0 }
  0xb4   : > { %v571_v36 = vadd.f32 1.4214138, %v555_v27  ;;  %v531_v46 = vmul.f32 1.0614054, %v1299_v39  ;;  %v1062_v61 = vpop.eup %1061  ;;  %1073 = vpow2.f32 %v702_v55  ;;  %v704_v19 = vmul.f32 1.442695, %v685_v60 }
  0xb5   : > { %v586_v40 = vmul.f32 %v1267_v2, %v570_v33  ;;  %v546_v41 = vadd.f32 -1.4531521, %v530_v34  ;;  %v1315_v8 = vpop.eup %1063  ;;  %v500_v27 = vadd.f32 1.0, %v484_v15  ;;  %v1331_v33 = vmul.f32 0.70710677, %v1320_v11  ;;  %v350_v34 = vpop.f32.mrf.mxu0 }
  0xb6   : > { %v587_v45 = vmul.f32 %v1278_v7, %v571_v36  ;;  %v547_v54 = vadd.f32 -1.4531521, %v531_v46  ;;  %v524_v14 = vmul.f32 1.0614054, %v1315_v8  ;;  %v1066_v16 = vpop.eup %1065  ;;  %vm429_vm6 = vcmp.ge.f32.partialorder %v1282_v10, 0.0 }
  0xb7   : > { %v602_v49 = vadd.f32 -0.28449672, %v586_v40  ;;  %v562_v50 = vmul.f32 %v1295_v26, %v546_v41  ;;  %v1324_v21 = vpop.eup %1067  ;;  %1075 = vrcp.f32 %v500_v27  ;;  %vm436_vm7 = vcmp.ge.f32.partialorder %v1303_v43, 0.0 }
  0xb8   : > { %v603_v53 = vadd.f32 -0.28449672, %v587_v45  ;;  %v563_v48 = vmul.f32 %v1299_v39, %v547_v54  ;;  %v540_v24 = vadd.f32 -1.4531521, %v524_v14  ;;  %v525_v32 = vmul.f32 1.0614054, %v1324_v21  ;;  %v1070_v35 = vpop.eup %1069 }
  0xb9   : > { %v618_v62 = vmul.f32 %v1267_v2, %v602_v49  ;;  %v578_v63 = vadd.f32 1.4214138, %v562_v50  ;;  %v1336_v49 = vadd.f32 %v350_v34, %v1240_v29  ;;  %1077 = vpow2.f32 %v704_v19 }
  0xba   : > { %v619_v9 = vmul.f32 %v1278_v7, %v603_v53  ;;  %v579_v18 = vadd.f32 1.4214138, %v563_v48  ;;  %v556_v38 = vmul.f32 %v1315_v8, %v540_v24  ;;  %v541_v42 = vadd.f32 -1.4531521, %v525_v32 }
  0xbb   : > { %v634_v12 = vadd.f32 0.2548296, %v618_v62  ;;  %v594_v13 = vmul.f32 %v1295_v26, %v578_v63  ;;  %v469_v62 = vand.u32 2147483647, %v1331_v33  ;;  %vm437_vm8 = vcmp.ge.f32.partialorder %v1331_v33, 0.0 }
  0xbc   : > { %v635_v17 = vadd.f32 0.2548296, %v619_v9  ;;  %v595_v31 = vmul.f32 %v1299_v39, %v579_v18  ;;  %v572_v47 = vadd.f32 1.4214138, %v556_v38  ;;  %v557_v54 = vmul.f32 %v1324_v21, %v541_v42 }
  0xbd   : > { %v650_v22 = vmul.f32 %v1267_v2, %v634_v12  ;;  %v610_v23 = vadd.f32 -0.28449672, %v594_v13  ;;  %v1072_v2 = vpop.eup %1071  ;;  %v453_v43 = vsel %vm437_vm8, 1.0, %v1141_v3 }
  0xbe   : > { %v651_v28 = vmul.f32 %v1278_v7, %v635_v17  ;;  %v611_v41 = vadd.f32 -0.28449672, %v595_v31  ;;  %v676_v7 = vsub.f32 0.0, %v468_v0  ;;  %v1074_v50 = vpop.eup %1073  ;;  %v573_v48 = vadd.f32 1.4214138, %v557_v54 }
  0xbf   : > { %v730_v36 = vmul.f32 %v1062_v61, %v650_v22  ;;  %v626_v37 = vmul.f32 %v1295_v26, %v610_v23  ;;  %v588_v61 = vmul.f32 %v1315_v8, %v572_v47  ;;  %v1345_v13 = vpop.eup %1075  ;;  %v485_v17 = vmul.f32 0.3275911, %v469_v62 }
  0xc0   : > { %v731_v40 = vmul.f32 %v1066_v16, %v651_v28  ;;  %v627_v53 = vmul.f32 %v1299_v39, %v611_v41  ;;  %v692_v12 = vmul.f32 %v676_v7, %v468_v0  ;;  %v532_v19 = vmul.f32 1.0614054, %v1345_v13  ;;  %v1078_v24 = vpop.eup %1077 }
  0xc1   : > { %v746_v45 = vsub.f32 1.0, %v730_v36  ;;  %v642_v46 = vadd.f32 0.2548296, %v626_v37  ;;  %v604_v16 = vadd.f32 -0.28449672, %v588_v61  ;;  %v501_v0 = vadd.f32 1.0, %v485_v17  ;;  %v379_v37 = vpop.f32.mrf.mxu1 }
  0xc2   : > { %v747_v52 = vsub.f32 1.0, %v731_v40  ;;  %v643_v9 = vadd.f32 0.2548296, %v627_v53  ;;  %v548_v32 = vadd.f32 -1.4531521, %v532_v19  ;;  %v1374_v53 = vadd.f32 %v379_v37, %v1242_v30 }
  0xc3   : > { %v762_v55 = vmul.f32 %v746_v45, %v1271_v4  ;;  %v658_v60 = vmul.f32 %v1295_v26, %v642_v46  ;;  %v589_v26 = vmul.f32 %v1324_v21, %v573_v48  ;;  %v620_v23 = vmul.f32 %v1315_v8, %v604_v16 }
  0xc4   : > { %v763_v63 = vmul.f32 %v747_v52, %v1274_v5  ;;  %v659_v4 = vmul.f32 %v1299_v39, %v643_v9  ;;  %1079 = vrcp.f32 %v501_v0  ;;  %v718_v40 = vmul.f32 1.442695, %v692_v12 }
  0xc5   : > { %v778_v14 = vadd.f32 1.0, %v762_v55  ;;  %v738_v15 = vmul.f32 %v1070_v35, %v658_v60  ;;  %v605_v31 = vadd.f32 -0.28449672, %v589_v26  ;;  %v1365_v41 = vmul.f32 0.70710677, %v1336_v49 }
  0xc6   : > { %v779_v18 = vadd.f32 1.0, %v763_v63  ;;  %v739_v28 = vmul.f32 %v1072_v2, %v659_v4  ;;  %v444_v46 = vsel %vm428_vm5, 1.0, %v1141_v3  ;;  %v677_v52 = vsub.f32 0.0, %v469_v62 }
  0xc7   : > { %v794_v22 = vmul.f32 %v778_v14, %v1260_v58  ;;  %v754_v5 = vsub.f32 1.0, %v738_v15  ;;  %v636_v58 = vadd.f32 0.2548296, %v620_v23  ;;  %v621_v36 = vmul.f32 %v1324_v21, %v605_v31 }
  0xc8   : > { %v795_v27 = vmul.f32 %v779_v18, %v1262_v59  ;;  %v755_v35 = vsub.f32 1.0, %v739_v28  ;;  %v564_v59 = vmul.f32 %v1345_v13, %v548_v32  ;;  %1081 = vpow2.f32 %v718_v40 }
  0xc9   : > { %v770_v39 = vmul.f32 %v754_v5, %v1287_v20  ;;  %v652_v2 = vmul.f32 %v1315_v8, %v636_v58  ;;  %v403_v20 = vmul.f32 0.5, %v1248_v44  ;;  %v637_v7 = vadd.f32 0.2548296, %v621_v36 }
  0xca   : > { %v810_v34 = vpack.c.bf16 %v795_v27, %v794_v22  ;;  %v771_v42 = vmul.f32 %v755_v35, %v1311_v51  ;;  %v580_v45 = vadd.f32 1.4214138, %v564_v59  ;;  %v1379_v60 = vpop.eup %1079  ;;  %v462_v1 = vand.u32 2147483647, %v1365_v41  ;;  %v360_v22 = vpop.f32.mrf.mxu2 }
  0xcb   : > { %v786_v38 = vadd.f32 1.0, %v770_v39  ;;  %v732_v47 = vmul.f32 %v1074_v50, %v652_v2  ;;  %v653_v55 = vmul.f32 %v1324_v21, %v637_v7  ;;  %v533_v9 = vmul.f32 1.0614054, %v1379_v60 }
  0xcc   : > { %818 = vst [vmem:[%s1357_s7] sm:$0xff] %v810_v34  ;;  %v787_v54 = vadd.f32 1.0, %v771_v42  ;;  %v596_v44 = vmul.f32 %v1345_v13, %v580_v45  ;;  %v693_v48 = vmul.f32 %v677_v52, %v469_v62  ;;  %v478_v12 = vmul.f32 0.3275911, %v462_v1  ;;  %v352_v52 = vpop.f32.mrf.mxu0 }
  0xcd   : > { %v802_v8 = vmul.f32 %v786_v38, %v1276_v6  ;;  %v748_v51 = vsub.f32 1.0, %v732_v47  ;;  %v733_v61 = vmul.f32 %v1078_v24, %v653_v55  ;;  %v1385_v21 = vmul.f32 0.70710677, %v1374_v53  ;;  %v389_v24 = vpop.f32.mrf.mxu3 }
  0xce   : > { %v803_v50 = vmul.f32 %v787_v54, %v403_v20  ;;  %v612_v63 = vadd.f32 -0.28449672, %v596_v44  ;;  %v549_v17 = vadd.f32 -1.4531521, %v533_v9  ;;  %v396_v18 = vmul.f32 0.5, %v1255_v56  ;;  %v1082_v27 = vpop.eup %1081 }
  0xcf   : > { %v764_v6 = vmul.f32 %v748_v51, %v444_v46  ;;  %v749_v15 = vsub.f32 1.0, %v733_v61  ;;  %v445_v26 = vsel %vm429_vm6, 1.0, %v1141_v3  ;;  %v494_v19 = vadd.f32 1.0, %v478_v12 }
  0xd0   : > { %v814_v14 = vpack.c.bf16 %v803_v50, %v802_v8  ;;  %v628_v16 = vmul.f32 %v1345_v13, %v612_v63  ;;  %v397_v62 = vmul.f32 0.5, %v1258_v57  ;;  %v565_v0 = vmul.f32 %v1379_v60, %v549_v17 }
  0xd1   : > { %v780_v4 = vadd.f32 1.0, %v764_v6  ;;  %v765_v5 = vmul.f32 %v749_v15, %v445_v26  ;;  %v720_v31 = vmul.f32 1.442695, %v693_v48  ;;  %1083 = vrcp.f32 %v494_v19 }
  0xd2   : > { %822 = vst [vmem:[%s1357_s7 + $0x20] sm:$0xff] %v814_v14  ;;  %v644_v23 = vadd.f32 0.2548296, %v628_v16  ;;  %v463_v56 = vand.u32 2147483647, %v1385_v21  ;;  %v1398_v58 = vadd.f32 %v360_v22, %v1240_v29  ;;  %v1401_v57 = vadd.f32 %v389_v24, %v1242_v30  ;;  %v381_v14 = vpop.f32.mrf.mxu1 }
  0xd3   : > { %v796_v28 = vmul.f32 %v780_v4, %v396_v18  ;;  %v781_v32 = vadd.f32 1.0, %v765_v5  ;;  %v581_v39 = vadd.f32 1.4214138, %v565_v0  ;;  %1085 = vpow2.f32 %v720_v31 }
  0xd4   : > { %v660_v10 = vmul.f32 %v1345_v13, %v644_v23  ;;  %v479_v34 = vmul.f32 0.3275911, %v463_v56  ;;  %v1406_v38 = vmul.f32 0.70710677, %v1398_v58  ;;  %v670_v40 = vsub.f32 0.0, %v462_v1 }
  0xd5   : > { %v797_v35 = vmul.f32 %v781_v32, %v397_v62  ;;  %v597_v59 = vmul.f32 %v1379_v60, %v581_v39  ;;  %v1414_v45 = vmul.f32 0.70710677, %v1401_v57  ;;  %v404_v8 = vmul.f32 0.5, %v1293_v25 }
  0xd6   : > { %v740_v36 = vmul.f32 %v1082_v27, %v660_v10  ;;  %v495_v37 = vadd.f32 1.0, %v479_v34  ;;  %v1411_v7 = vand.u32 2147483647, %v1406_v38  ;;  %v452_v54 = vsel %vm436_vm7, 1.0, %v1141_v3 }
  0xd7   : > { %v811_v13 = vpack.c.bf16 %v797_v35, %v796_v28  ;;  %v613_v2 = vadd.f32 -0.28449672, %v597_v59  ;;  %v1408_v20 = vpop.eup %1083  ;;  %v405_v44 = vmul.f32 0.5, %v1320_v11  ;;  %v686_v61 = vmul.f32 %v670_v40, %v462_v1 }
  0xd8   : > { %v756_v42 = vsub.f32 1.0, %v740_v36  ;;  %1087 = vrcp.f32 %v495_v37  ;;  %v526_v47 = vmul.f32 1.0614054, %v1408_v20  ;;  %v486_v55 = vmul.f32 0.3275911, %v1411_v7 }
  0xd9   : > { %819 = vst [vmem:[%s1357_s7 + $0x8] sm:$0xff] %v811_v13  ;;  %v629_v46 = vmul.f32 %v1379_v60, %v613_v2  ;;  %v1427_v6 = vand.u32 2147483647, %v1414_v45  ;;  %v1430_v25 = vadd.f32 %v352_v52, %v1240_v29  ;;  %v1086_v48 = vpop.eup %1085  ;;  %v1435_v12 = vmul.f32 0.5, %v1336_v49 }
  0xda   : > { %v542_v50 = vadd.f32 -1.4531521, %v526_v47  ;;  %v772_v63 = vmul.f32 %v756_v42, %v452_v54  ;;  %v502_v9 = vadd.f32 1.0, %v486_v55  ;;  %vm430_vm9 = vcmp.ge.f32.partialorder %v1365_v41, 0.0 }
  0xdb   : > { %v645_v51 = vadd.f32 0.2548296, %v629_v46  ;;  %v671_v15 = vsub.f32 0.0, %v463_v56  ;;  %v487_v16 = vmul.f32 0.3275911, %v1427_v6  ;;  %v1447_v22 = vadd.f32 %v381_v14, %v1242_v30 }
  0xdc   : > { %v558_v11 = vmul.f32 %v1408_v20, %v542_v50  ;;  %1089 = vrcp.f32 %v502_v9  ;;  %v706_v4 = vmul.f32 1.442695, %v686_v61  ;;  %v1444_v49 = vmul.f32 0.70710677, %v1430_v25  ;;  %v362_v50 = vpop.f32.mrf.mxu2 }
  0xdd   : > { %v661_v33 = vmul.f32 %v1379_v60, %v645_v51  ;;  %v788_v60 = vadd.f32 1.0, %v772_v63  ;;  %v503_v19 = vadd.f32 1.0, %v487_v16  ;;  %v446_v41 = vsel %vm430_vm9, 1.0, %v1141_v3 }
  0xde   : > { %v1438_v1 = vpop.eup %1087  ;;  %v574_v18 = vadd.f32 1.4214138, %v558_v11  ;;  %v1452_v0 = vmul.f32 0.5, %v1374_v53  ;;  %v687_v24 = vmul.f32 %v671_v15, %v463_v56  ;;  %v464_v27 = vand.u32 2147483647, %v1444_v49 }
  0xdf   : > { %v741_v17 = vmul.f32 %v1086_v48, %v661_v33  ;;  %v527_v26 = vmul.f32 1.0614054, %v1438_v1  ;;  %1091 = vrcp.f32 %v503_v19  ;;  %v804_v39 = vmul.f32 %v788_v60, %v404_v8 }
  0xe0   : > { %v590_v5 = vmul.f32 %v1408_v20, %v574_v18  ;;  %1093 = vpow2.f32 %v706_v4  ;;  %v678_v34 = vsub.f32 0.0, %v1411_v7  ;;  %v480_v35 = vmul.f32 0.3275911, %v464_v27 }
  0xe1   : > { %v757_v62 = vsub.f32 1.0, %v741_v17  ;;  %v543_v23 = vadd.f32 -1.4531521, %v527_v26  ;;  %v1460_v36 = vmul.f32 0.70710677, %v1447_v22  ;;  %vm431_vm10 = vcmp.ge.f32.partialorder %v1385_v21, 0.0 }
  0xe2   : > { %v606_v31 = vadd.f32 -0.28449672, %v590_v5  ;;  %v1456_v10 = vpop.eup %1089  ;;  %v708_v13 = vmul.f32 1.442695, %v687_v24  ;;  %v496_v2 = vadd.f32 1.0, %v480_v35  ;;  %v694_v54 = vmul.f32 %v678_v34, %v1411_v7 }
  0xe3   : > { %v773_v28 = vmul.f32 %v757_v62, %v453_v43  ;;  %v559_v32 = vmul.f32 %v1438_v1, %v543_v23  ;;  %v534_v37 = vmul.f32 1.0614054, %v1456_v10  ;;  %v1466_v40 = vand.u32 2147483647, %v1460_v36 }
  0xe4   : > { %v622_v56 = vmul.f32 %v1408_v20, %v606_v31  ;;  %v679_v55 = vsub.f32 0.0, %v1427_v6  ;;  %1095 = vrcp.f32 %v496_v2  ;;  %v672_v33 = vsub.f32 0.0, %v464_v27 }
  0xe5   : > { %v789_v53 = vadd.f32 1.0, %v773_v28  ;;  %v575_v59 = vadd.f32 1.4214138, %v559_v32  ;;  %v550_v52 = vadd.f32 -1.4531521, %v534_v37  ;;  %v1469_v8 = vpop.eup %1091  ;;  %1097 = vpow2.f32 %v708_v13 }
  0xe6   : > { %v638_v46 = vadd.f32 0.2548296, %v622_v56  ;;  %v481_v51 = vmul.f32 0.3275911, %v1466_v40  ;;  %v1094_v61 = vpop.eup %1093  ;;  %v535_v43 = vmul.f32 1.0614054, %v1469_v8  ;;  %v1480_v16 = vadd.f32 %v362_v50, %v1240_v29 }
  0xe7   : > { %v805_v42 = vmul.f32 %v789_v53, %v405_v44  ;;  %v591_v47 = vmul.f32 %v1438_v1, %v575_v59  ;;  %v566_v48 = vmul.f32 %v1456_v10, %v550_v52  ;;  %v722_v17 = vmul.f32 1.442695, %v694_v54 }
  0xe8   : > { %v654_v9 = vmul.f32 %v1408_v20, %v638_v46  ;;  %v497_v11 = vadd.f32 1.0, %v481_v51  ;;  %v551_v18 = vadd.f32 -1.4531521, %v535_v43  ;;  %v695_v20 = vmul.f32 %v679_v55, %v1427_v6  ;;  %v391_v6 = vpop.f32.mrf.mxu3 }
  0xe9   : > { %v815_v63 = vpack.c.bf16 %v805_v42, %v804_v39  ;;  %v607_v44 = vadd.f32 -0.28449672, %v591_v47  ;;  %v582_v15 = vadd.f32 1.4214138, %v566_v48  ;;  %v447_v26 = vsel %vm431_vm10, 1.0, %v1141_v3 }
  0xea   : > { %v734_v7 = vmul.f32 %v1094_v61, %v654_v9  ;;  %1099 = vrcp.f32 %v497_v11  ;;  %v1487_v62 = vpop.eup %1095  ;;  %vm438_vm11 = vcmp.ge.f32.partialorder %v1406_v38, 0.0  ;;  %v567_v29 = vmul.f32 %v1469_v8, %v551_v18 }
  0xeb   : > { %823 = vst [vmem:[%s1357_s7 + $0x28] sm:$0xff] %v815_v63  ;;  %v623_v14 = vmul.f32 %v1438_v1, %v607_v44  ;;  %v598_v19 = vmul.f32 %v1456_v10, %v582_v15  ;;  %v688_v5 = vmul.f32 %v672_v33, %v464_v27  ;;  %v1492_v23 = vmul.f32 0.70710677, %v1480_v16  ;;  %v1098_v32 = vpop.eup %1097 }
  0xec   : > { %v750_v4 = vsub.f32 1.0, %v734_v7  ;;  %v528_v21 = vmul.f32 1.0614054, %v1487_v62  ;;  %1101 = vpow2.f32 %v722_v17  ;;  %v583_v39 = vadd.f32 1.4214138, %v567_v29 }
  0xed   : > { %v639_v60 = vadd.f32 0.2548296, %v623_v14  ;;  %v614_v31 = vadd.f32 -0.28449672, %v598_v19  ;;  %v724_v34 = vmul.f32 1.442695, %v695_v20  ;;  %v1501_v59 = vadd.f32 %v391_v6, %v1242_v30 }
  0xee   : > { %v766_v24 = vmul.f32 %v750_v4, %v446_v41  ;;  %v1497_v35 = vand.u32 2147483647, %v1492_v23  ;;  %v544_v56 = vadd.f32 -1.4531521, %v528_v21  ;;  %v710_v37 = vmul.f32 1.442695, %v688_v5 }
  0xef   : > { %v655_v28 = vmul.f32 %v1438_v1, %v639_v60  ;;  %v630_v27 = vmul.f32 %v1456_v10, %v614_v31  ;;  %v599_v1 = vmul.f32 %v1469_v8, %v583_v39  ;;  %v673_v13 = vsub.f32 0.0, %v1466_v40 }
  0xf0   : > { %v1503_v41 = vpop.eup %1099  ;;  %v488_v2 = vmul.f32 0.3275911, %v1497_v35  ;;  %v782_v42 = vadd.f32 1.0, %v766_v24  ;;  %v560_v52 = vmul.f32 %v1487_v62, %v544_v56  ;;  %1103 = vpow2.f32 %v724_v34 }
  0xf1   : > { %v735_v53 = vmul.f32 %v1098_v32, %v655_v28  ;;  %v646_v47 = vadd.f32 0.2548296, %v630_v27  ;;  %v615_v54 = vadd.f32 -0.28449672, %v599_v1  ;;  %v529_v55 = vmul.f32 1.0614054, %v1503_v41 }
  0xf2   : > { %v504_v30 = vadd.f32 1.0, %v488_v2  ;;  %v576_v61 = vadd.f32 1.4214138, %v560_v52  ;;  %v1512_v63 = vmul.f32 0.70710677, %v1501_v59  ;;  %v1102_v9 = vpop.eup %1101  ;;  %v689_v43 = vmul.f32 %v673_v13, %v1466_v40 }
  0xf3   : > { %v751_v46 = vsub.f32 1.0, %v735_v53  ;;  %v662_v50 = vmul.f32 %v1456_v10, %v646_v47  ;;  %v631_v44 = vmul.f32 %v1469_v8, %v615_v54  ;;  %v545_v48 = vadd.f32 -1.4531521, %v529_v55 }
  0xf4   : > { %1105 = vrcp.f32 %v504_v30  ;;  %v798_v33 = vmul.f32 %v782_v42, %v1435_v12  ;;  %v592_v14 = vmul.f32 %v1487_v62, %v576_v61  ;;  %v454_v10 = vsel %vm438_vm11, 1.0, %v1141_v3 }
  0xf5   : > { %v767_v51 = vmul.f32 %v751_v46, %v447_v26  ;;  %v742_v7 = vmul.f32 %v1102_v9, %v662_v50  ;;  %v647_v15 = vadd.f32 0.2548296, %v631_v44  ;;  %v561_v17 = vmul.f32 %v1503_v41, %v545_v48 }
  0xf6   : > { %v608_v4 = vadd.f32 -0.28449672, %v592_v14  ;;  %v1524_v40 = vand.u32 2147483647, %v1512_v63  ;;  %v1104_v12 = vpop.eup %1103  ;;  %1107 = vpow2.f32 %v710_v37  ;;  %v712_v19 = vmul.f32 1.442695, %v689_v43 }
  0xf7   : > { %v783_v11 = vadd.f32 1.0, %v767_v51  ;;  %v758_v20 = vsub.f32 1.0, %v742_v7  ;;  %v663_v26 = vmul.f32 %v1469_v8, %v647_v15  ;;  %v577_v60 = vadd.f32 1.4214138, %v561_v17 }
  0xf8   : > { %v624_v5 = vmul.f32 %v1487_v62, %v608_v4  ;;  %v489_v6 = vmul.f32 0.3275911, %v1524_v40  ;;  %vm439_vm12 = vcmp.ge.f32.partialorder %v1414_v45, 0.0  ;;  %v680_v31 = vsub.f32 0.0, %v1497_v35 }
  0xf9   : > { %v799_v18 = vmul.f32 %v783_v11, %v1452_v0  ;;  %v774_v38 = vmul.f32 %v758_v20, %v454_v10  ;;  %v743_v0 = vmul.f32 %v1104_v12, %v663_v26  ;;  %v593_v28 = vmul.f32 %v1503_v41, %v577_v60 }
  0xfa   : > { %v1106_v24 = vpop.eup %1105  ;;  %v406_v8 = vmul.f32 0.5, %v1398_v58  ;;  %v640_v21 = vadd.f32 0.2548296, %v624_v5  ;;  %v505_v27 = vadd.f32 1.0, %v489_v6  ;;  %v455_v56 = vsel %vm439_vm12, 1.0, %v1141_v3 }
  0xfb   : > { %v812_v29 = vpack.c.bf16 %v799_v18, %v798_v33  ;;  %v536_v32 = vmul.f32 1.0614054, %v1106_v24  ;;  %v790_v39 = vadd.f32 1.0, %v774_v38  ;;  %v759_v34 = vsub.f32 1.0, %v743_v0 }
  0xfc   : > { %v609_v53 = vadd.f32 -0.28449672, %v593_v28  ;;  %v656_v1 = vmul.f32 %v1487_v62, %v640_v21  ;;  %1109 = vpow2.f32 %v712_v19  ;;  %v1108_v37 = vpop.eup %1107  ;;  %v696_v42 = vmul.f32 %v680_v31, %v1497_v35 }
  0xfd   : > { %820 = vst [vmem:[%s1357_s7 + $0x10] sm:$0xff] %v812_v29  ;;  %v552_v45 = vadd.f32 -1.4531521, %v536_v32  ;;  %v775_v13 = vmul.f32 %v759_v34, %v455_v56  ;;  %1111 = vrcp.f32 %v505_v27  ;;  %vm432_vm13 = vcmp.ge.f32.partialorder %v1444_v49, 0.0 }
  0xfe   : > { %v625_v2 = vmul.f32 %v1503_v41, %v609_v53  ;;  %v736_v58 = vmul.f32 %v1108_v37, %v656_v1  ;;  %v806_v47 = vmul.f32 %v790_v39, %v406_v8  ;;  %v407_v52 = vmul.f32 0.5, %v1401_v57 }
  0xff   : > { %v568_v46 = vmul.f32 %v1106_v24, %v552_v45  ;;  %v791_v54 = vadd.f32 1.0, %v775_v13  ;;  %v448_v50 = vsel %vm432_vm13, 1.0, %v1141_v3  ;;  %v726_v9 = vmul.f32 1.442695, %v696_v42 }
 0x100   : > { %v641_v55 = vadd.f32 0.2548296, %v625_v2  ;;  %v752_v30 = vsub.f32 1.0, %v736_v58  ;;  %vm433_vm14 = vcmp.ge.f32.partialorder %v1460_v36, 0.0  ;;  %v681_v57 = vsub.f32 0.0, %v1524_v40 }
 0x101   : > { %v584_v62 = vadd.f32 1.4214138, %v568_v46  ;;  %v807_v51 = vmul.f32 %v791_v54, %v407_v52  ;;  %1113 = vpow2.f32 %v726_v9  ;;  %v449_v15 = vsel %vm433_vm14, 1.0, %v1141_v3 }
 0x102   : > { %v657_v61 = vmul.f32 %v1503_v41, %v641_v55  ;;  %v1110_v35 = vpop.eup %1109  ;;  %v768_v44 = vmul.f32 %v752_v30, %v448_v50  ;;  %v400_v18 = vmul.f32 0.5, %v1430_v25  ;;  %v697_v4 = vmul.f32 %v681_v57, %v1524_v40 }
 0x103   : > { %v600_v48 = vmul.f32 %v1106_v24, %v584_v62  ;;  %v1112_v49 = vpop.eup %1111  ;;  %v816_v43 = vpack.c.bf16 %v807_v51, %v806_v47  ;;  %v401_v60 = vmul.f32 0.5, %v1447_v22  ;;  %vm440_vm15 = vcmp.ge.f32.partialorder %v1492_v23, 0.0 }
 0x104   : > { %v737_v33 = vmul.f32 %v1110_v35, %v657_v61  ;;  %v537_v7 = vmul.f32 1.0614054, %v1112_v49  ;;  %v784_v14 = vadd.f32 1.0, %v768_v44  ;;  %v728_v0 = vmul.f32 1.442695, %v697_v4 }
 0x105   : > { %v616_v11 = vadd.f32 -0.28449672, %v600_v48  ;;  %824 = vst [vmem:[%s1357_s7 + $0x30] sm:$0xff] %v816_v43  ;;  %v456_v39 = vsel %vm440_vm15, 1.0, %v1141_v3  ;;  %vm441_vm0 = vcmp.ge.f32.partialorder %v1512_v63, 0.0  ;;  %v408_v45 = vmul.f32 0.5, %v1480_v16 }
 0x106   : > { %v753_v10 = vsub.f32 1.0, %v737_v33  ;;  %v553_v17 = vadd.f32 -1.4531521, %v537_v7  ;;  %v800_v26 = vmul.f32 %v784_v14, %v400_v18  ;;  %1115 = vpow2.f32 %v728_v0 }
 0x107   : > { %v632_v41 = vmul.f32 %v1106_v24, %v616_v11  ;;  %v1114_v5 = vpop.eup %1113  ;;  %v457_v1 = vsel %vm441_vm0, 1.0, %v1141_v3  ;;  %v409_v13 = vmul.f32 0.5, %v1501_v59 }
 0x108   : > { %v769_v20 = vmul.f32 %v753_v10, %v449_v15  ;;  %v569_v12 = vmul.f32 %v1112_v49, %v553_v17 }
 0x109   : > { %v648_v36 = vadd.f32 0.2548296, %v632_v41 }
 0x10a   : > { %v785_v19 = vadd.f32 1.0, %v769_v20  ;;  %v585_v38 = vadd.f32 1.4214138, %v569_v12 }
 0x10b   : > { %v664_v29 = vmul.f32 %v1106_v24, %v648_v36 }
 0x10c   : > { %v801_v6 = vmul.f32 %v785_v19, %v401_v60  ;;  %v601_v31 = vmul.f32 %v1112_v49, %v585_v38  ;;  %v1116_v34 = vpop.eup %1115 }
 0x10d   : > { %v744_v28 = vmul.f32 %v1114_v5, %v664_v29 }
 0x10e   : > { %v813_v8 = vpack.c.bf16 %v801_v6, %v800_v26  ;;  %v617_v21 = vadd.f32 -0.28449672, %v601_v31 }
 0x10f   : > { %v760_v25 = vsub.f32 1.0, %v744_v28 }
 0x110   : > { %821 = vst [vmem:[%s1357_s7 + $0x18] sm:$0xff] %v813_v8  ;;  %v633_v40 = vmul.f32 %v1112_v49, %v617_v21 }
 0x111   : > { %v776_v22 = vmul.f32 %v760_v25, %v456_v39 }
 0x112   : > { %v649_v32 = vadd.f32 0.2548296, %v633_v40 }
 0x113   : > { %v792_v27 = vadd.f32 1.0, %v776_v22 }
 0x114   : > { %v665_v24 = vmul.f32 %v1112_v49, %v649_v32 }
 0x115   : > { %v808_v23 = vmul.f32 %v792_v27, %v408_v45 }
 0x116   : > { %v745_v53 = vmul.f32 %v1116_v34, %v665_v24 }
 0x118   : > { %v761_v56 = vsub.f32 1.0, %v745_v53 }
 0x11a   : > { %v777_v37 = vmul.f32 %v761_v56, %v457_v1 }
 0x11c   : > { %v793_v2 = vadd.f32 1.0, %v777_v37 }
 0x11e   : > { %v809_v42 = vmul.f32 %v793_v2, %v409_v13 }
 0x120   : > { %v817_v58 = vpack.c.bf16 %v809_v42, %v808_v23 }
 0x122   : > { %825 = vst [vmem:[%s1357_s7 + $0x38] sm:$0xff] %v817_v58 }
 0x123 PF: > { %s13_s14 = sadd.s32 1, %s1139_s14   ;;  %s1570_s12 = smov %s1135_s13 }
 0x124   : > { %p10_p5 = scmp.ge.s32.totalorder %s13_s14, 4   ;;  %s1571_s13 = smov %s1573_s15 }
 0x126   :  { %12 = sbr.rel (!%p10_p5) target bundleno = 2 (0x2), region = 68 }

// kernel: feed_forward.3
= control target key start
LH: loop header
LB: loop body
LE: loop exit
PB: predicated region body
PF: predicated region fallthrough
CT: control target
= control target key end

     0   :  { %8 = vsyncpa [#allocation3], 0  ;;  %s1085_s0 = inlined_call_operand.vmem [shape: bf16[128,256], index: 0, kind: input, shape index: {}]   ;;  %s1086_s1 = inlined_call_operand.vmem [shape: bf16[256,64], index: 1, kind: input, shape index: {}]   ;;  %s1087_s2 = inlined_call_operand.vmem [shape: f32[1,64], index: 2, kind: input, shape index: {}]   ;;  %s1088_s3 = inlined_call_operand.hbm [shape: f32[128,64], index: 3, kind: output, shape index: {}]  }
   0x1   :  { %10 = vsyncpa [#allocation3 + $0x1], 0  ;;  %s897_s12 = smov 0   ;;  %s899_s13 = smov 0  }
   0x2   :  { %s901_s14 = smov 0   ;;  %s903_s15 = smov 0  }
   0x3   :  { %s905_s16 = smov 0   ;;  %s907_s17 = smov 0  }
   0x4 LB: > { %s583_s18 = sadd.s32 4294967295, %s873_s17   ;;  %s584_s19 = sadd.s32 4294967294, %s873_s17   ;;  %s873_s17 = sphi %s907_s17, %s16_s17   ;;  %s869_s16 = sphi %s905_s16, %s1095_s16   ;;  %s865_s15 = sphi %s903_s15, %s1094_s15   ;;  %s861_s14 = sphi %s901_s14, %s1093_s14   ;;  %s857_s13 = sphi %s899_s13, %s1092_s13   ;;  %s853_s12 = sphi %s897_s12, %s1091_s12  }
   0x5   : > { %s28_s20 = sadd.s32 1, %s869_s16  ;;  %s115_s21 = sadd.s32 1, %s861_s14 }
   0x6   : > { %p30_p0 = scmp.ge.s32.totalorder %s28_s20, 2  ;;  %p125_p1 = scmp.ne.s32.totalorder %s861_s14, %s857_s13 }
   0x7   : > { %p126_p2 = scmp.eq.s32.totalorder %s583_s18, 1  ;;  %p131_p3 = scmp.ne.s32.totalorder %s857_s13, %s853_s12 }
   0x8   : > { %s1097_s20 = smov (%p30_p0, %s28_s20), 0  ;;  %p132_p5 = scmp.eq.s32.totalorder %s584_s19, 1 }
   0x9   : > { %p937_p4 = por %p126_p2, %p125_p1  ;;  %s110_s23 = ssub.s32 %s869_s16, %s1097_s20 }
   0xa   : > { %p589_p6 = scmp.ge.s32.totalorder %s873_s17, 1  ;;  %p113_p7 = scmp.eq.s32.totalorder %s110_s23, 0 }
   0xb   : > { %p944_p8 = por %p132_p5, %p131_p3  ;;  %p173_p9 = scmp.lt.s32.totalorder %s873_s17, 3 }
   0xc   : > { %s950_s25 = scalar_select %p113_p7, %s861_s14, %s115_s21  }
   0xd   : > { %p174_p10 = pnand %p589_p6, %p173_p9 }
   0xe   : > { %s591_s11 = sshll.u32 (!%p174_p10), %s865_s15, 3  ;;  %s202_s29 = sand.u32 (!%p174_p10), 1, %s857_s13  }
   0xf   : > { %177 = sbr.rel (%p174_p10) target bundleno = 216 (0xd8), region = 32  ;;  %p206_p11 = scmp.lt.s32.totalorder (!%p174_p10), %s591_s11, 15 }
  0x10   : > { %s590_s5 = sshll.u32 (!%p174_p10), %s202_s29, 6  ;;  %s815_s27 = scalar_lea.hbm (!%p174_p10), %s1088_s3, 128 }
  0x11   : > { %s1028_s6 = scalar_lea.vmem (!%p174_p10), [#allocation2], %s590_s5 }
  0x12   : > { %s481_s18 = sshll.u32 (!%p174_p10), %s1028_s6, 4  ;;  %s482_s18 = int_to_ptr.vmem [resolvable:$true] %s481_s18 }
  0x14   : > { %v711_v0 = vld [vmem:[%s1086_s1 + $0x38] sm:$0xff]  ;;  %v710_v2 = vld [vmem:[%s1086_s1 + $0x30] sm:$0xff]  ;;  %v709_v4 = vld [vmem:[%s1086_s1 + $0x28] sm:$0xff]  ;;  %s1099_s11 = smov (!%p206_p11, %s591_s11), 15  ;;  %vm458_vm0 = vcmask 523264  }
  0x15   : > { %v719_v1 = vld [vmem:[%s1086_s1 + $0x78] sm:$0xff]  ;;  %400 = vmatpush.bf16.msra.mxu0 %v711_v0  ;;  %721 = vmatpush.bf16.msra.mxu2 %v711_v0  ;;  %v718_v3 = vld [vmem:[%s1086_s1 + $0x70] sm:$0xff]  ;;  %v717_v5 = vld [vmem:[%s1086_s1 + $0x68] sm:$0xff]  ;;  %s695_s7 = sshll.u32 %s1099_s11, 3 }
  0x16   : > { %429 = vmatpush.bf16.msra.mxu1 %v719_v1  ;;  %729 = vmatpush.bf16.msra.mxu3 %v719_v1  ;;  %v708_v6 = vld [vmem:[%s1086_s1 + $0x20] sm:$0xff]  ;;  %v707_v8 = vld [vmem:[%s1086_s1 + $0x18] sm:$0xff]  ;;  %v706_v10 = vld [vmem:[%s1086_s1 + $0x10] sm:$0xff]  ;;  %s995_s19 = scalar_lea.vmem %s1085_s0, %s695_s7  ;;  %s720_s7 = sshll.u32 %s865_s15, 6 }
  0x17   : > { %v716_v7 = vld [vmem:[%s1086_s1 + $0x60] sm:$0xff]  ;;  %v715_v9 = vld [vmem:[%s1086_s1 + $0x58] sm:$0xff]  ;;  %v714_v11 = vld [vmem:[%s1086_s1 + $0x50] sm:$0xff]  ;;  %s480_s10 = scalar_lea.hbm %s1088_s3, %s720_s7  ;;  %s468_s15 = scalar_lea.sflag [#allocation3], %s202_s29 }
  0x18   : > { %v705_v12 = vld [vmem:[%s1086_s1 + $0x8] sm:$0xff]  ;;  %v704_v14 = vld [vmem:[%s1086_s1] sm:$0xff]  ;;  %v604_v28 = vld [vmem:[%s995_s19 + $0x10] sm:$0xf] }
  0x19   : > { %401 = vmatpush.bf16.msra.mxu0 %v710_v2  ;;  %722 = vmatpush.bf16.msra.mxu2 %v710_v2  ;;  %v713_v13 = vld [vmem:[%s1086_s1 + $0x48] sm:$0xff]  ;;  %v712_v15 = vld [vmem:[%s1086_s1 + $0x40] sm:$0xff]  ;;  %v699_v29 = vld [vmem:[%s995_s19 + $0x14] sm:$0xf0] }
  0x1a   : > { %430 = vmatpush.bf16.msra.mxu1 %v718_v3  ;;  %730 = vmatpush.bf16.msra.mxu3 %v718_v3  ;;  %v596_v16 = vld [vmem:[%s995_s19] sm:$0xf]  ;;  %v697_v17 = vld [vmem:[%s995_s19 + $0x4] sm:$0xf0]  ;;  %v696_v20 = vld [vmem:[%s995_s19 + $0x4] sm:$0xf]  ;;  %v605_v36 = vor.u32 %v699_v29, %v604_v28 }
  0x1b   : > { %v612_v18 = vld [vmem:[%s995_s19 + $0x20] sm:$0xf]  ;;  %v701_v19 = vld [vmem:[%s995_s19 + $0x24] sm:$0xf0]  ;;  %v598_v21 = vld [vmem:[%s995_s19 + $0x8] sm:$0xf0]  ;;  %v597_v24 = vor.u32 %v697_v17, %v596_v16 }
  0x1c   : > { %v700_v22 = vld [vmem:[%s995_s19 + $0x24] sm:$0xf]  ;;  %v614_v23 = vld [vmem:[%s995_s19 + $0x28] sm:$0xf0]  ;;  %v613_v25 = vor.u32 %v701_v19, %v612_v18  ;;  %v601_v26 = vor.u32 %v696_v20, %v598_v21  ;;  %v620_v30 = vld [vmem:[%s995_s19 + $0x30] sm:$0xf] }
  0x1d   : > { %402 = vmatpush.bf16.msra.mxu0 %v709_v4  ;;  %723 = vmatpush.bf16.msra.mxu2 %v709_v4  ;;  %v617_v27 = vor.u32 %v700_v22, %v614_v23  ;;  %v703_v31 = vld [vmem:[%s995_s19 + $0x34] sm:$0xf0]  ;;  %v698_v32 = vld [vmem:[%s995_s19 + $0x14] sm:$0xf]  ;;  %v606_v33 = vld [vmem:[%s995_s19 + $0x18] sm:$0xf0] }
  0x1e   : > { %431 = vmatpush.bf16.msra.mxu1 %v717_v5  ;;  %731 = vmatpush.bf16.msra.mxu3 %v717_v5  ;;  %v702_v34 = vld [vmem:[%s995_s19 + $0x34] sm:$0xf]  ;;  %v622_v35 = vld [vmem:[%s995_s19 + $0x38] sm:$0xf0]  ;;  %v621_v37 = vor.u32 %v703_v31, %v620_v30  ;;  %v609_v38 = vor.u32 %v698_v32, %v606_v33  ;;  %v794_v40 = vld [vmem:[%s1087_s2] ss:$0 sm:$0xff] }
  0x1f   : > { %v625_v39 = vor.u32 %v702_v34, %v622_v35  ;;  %s483_s19 = sshll.u32 %s480_s10, 4  ;;  %s484_s19 = int_to_ptr.hbm [resolvable:$true] %s483_s19 }
  0x20   : > { %s809_s11 = sshra.s32 %s484_s19, 4  ;;  %s810_s11 = int_to_ptr.hbm [resolvable:$true] %s809_s11 }
  0x21   : > { %403 = vmatpush.bf16.msra.mxu0 %v708_v6  ;;  %724 = vmatpush.bf16.msra.mxu2 %v708_v6  ;;  %s811_s21 = scalar_lea.hbm %s810_s11, 64  ;;  %p816_p1 = scmp.lt.s32.totalorder %s810_s11, %s1088_s3 }
  0x22   : > { %432 = vmatpush.bf16.msra.mxu1 %v716_v7  ;;  %732 = vmatpush.bf16.msra.mxu3 %v716_v7  ;;  %p812_p12 = scmp.ne.s32.totalorder %s810_s11, %s811_s21  ;;  %p817_p2 = scmp.lt.s32.totalorder %s815_s27, %s811_s21 }
  0x24   : > { %p813_p13 = pnand %p812_p12, %p937_p4  ;;  %p818_p3 = por %p817_p2, %p816_p1 }
  0x25   : > { %404 = vmatpush.bf16.msra.mxu0 %v707_v8  ;;  %725 = vmatpush.bf16.msra.mxu2 %v707_v8 }
  0x26   : > { %433 = vmatpush.bf16.msra.mxu1 %v715_v9  ;;  %733 = vmatpush.bf16.msra.mxu3 %v715_v9  ;;  %p814_p0 = pneg %p813_p13 }
  0x28   : > { %p819_p5 = pnand %p818_p3, %p814_p0 }
  0x29   : > { %405 = vmatpush.bf16.msra.mxu0 %v706_v10  ;;  %726 = vmatpush.bf16.msra.mxu2 %v706_v10 }
  0x2a   : > { %434 = vmatpush.bf16.msra.mxu1 %v714_v11  ;;  %734 = vmatpush.bf16.msra.mxu3 %v714_v11 }
  0x2d   : > { %406 = vmatpush.bf16.msra.mxu0 %v705_v12  ;;  %727 = vmatpush.bf16.msra.mxu2 %v705_v12 }
  0x2e   : > { %435 = vmatpush.bf16.msra.mxu1 %v713_v13  ;;  %735 = vmatpush.bf16.msra.mxu3 %v713_v13 }
  0x31   : > { %407 = vmatpush.bf16.msra.mxu0 %v704_v14  ;;  %728 = vmatpush.bf16.msra.mxu2 %v704_v14 }
  0x32   : > { %436 = vmatpush.bf16.msra.mxu1 %v712_v15  ;;  %736 = vmatpush.bf16.msra.mxu3 %v712_v15 }
  0x34   : > { %408 = vmatmul.bf16.vlgmr.msra.gmra.mxu0 %v597_v24  ;;  %418 = vmatmul.bf16.vlgmr.msra.gmra.mxu2 %v613_v25 }
  0x35   : > { %437 = vmatmul.bf16.vlgmr.msra.gmra.mxu1 %v601_v26  ;;  %447 = vmatmul.bf16.vlgmr.msra.gmra.mxu3 %v617_v27 }
  0x44   : > { %413 = vmatmul.bf16.gmra.mxu0 %v605_v36  ;;  %423 = vmatmul.bf16.gmra.mxu2 %v621_v37 }
  0x45   : > { %442 = vmatmul.bf16.gmra.mxu1 %v609_v38  ;;  %452 = vmatmul.bf16.gmra.mxu3 %v625_v39 }
  0xb1   : > { %v409_v41 = vpop.f32.mrf.mxu0 }
  0xb2   : > { %v410_v42 = vadd.f32 %v794_v40, %v409_v41  ;;  %v438_v43 = vpop.f32.mrf.mxu1 }
  0xb4   : > { %v439_v44 = vadd.f32 %v438_v43, %v410_v42 }
  0xb6   : > { %459 = vst.msk [vmem:[%s1028_s6] sm:$0xff] %vm458_vm0, %v439_v44 }
  0xb7   : > { %v419_v45 = vpop.f32.mrf.mxu2 }
  0xb8   : > { %v420_v46 = vadd.f32 %v794_v40, %v419_v45  ;;  %v448_v47 = vpop.f32.mrf.mxu3 }
  0xb9   : > { %v411_v48 = vpop.f32.mrf.mxu0 }
  0xba   : > { %v449_v49 = vadd.f32 %v448_v47, %v420_v46  ;;  %v412_v50 = vadd.f32 %v794_v40, %v411_v48  ;;  %v440_v51 = vpop.f32.mrf.mxu1 }
  0xbc   : > { %463 = vst.msk [vmem:[%s1028_s6 + $0x20] sm:$0xff] %vm458_vm0, %v449_v49  ;;  %v441_v52 = vadd.f32 %v440_v51, %v412_v50 }
  0xbe   : > { %460 = vst.msk [vmem:[%s1028_s6 + $0x8] sm:$0xff] %vm458_vm0, %v441_v52 }
  0xbf   : > { %v421_v53 = vpop.f32.mrf.mxu2 }
  0xc0   : > { %v422_v54 = vadd.f32 %v794_v40, %v421_v53  ;;  %v450_v55 = vpop.f32.mrf.mxu3 }
  0xc1   : > { %v414_v56 = vpop.f32.mrf.mxu0 }
  0xc2   : > { %v451_v57 = vadd.f32 %v450_v55, %v422_v54  ;;  %v415_v58 = vadd.f32 %v794_v40, %v414_v56  ;;  %v443_v59 = vpop.f32.mrf.mxu1 }
  0xc4   : > { %464 = vst.msk [vmem:[%s1028_s6 + $0x28] sm:$0xff] %vm458_vm0, %v451_v57  ;;  %v444_v60 = vadd.f32 %v443_v59, %v415_v58 }
  0xc6   : > { %461 = vst.msk [vmem:[%s1028_s6 + $0x10] sm:$0xff] %vm458_vm0, %v444_v60 }
  0xc7   : > { %v424_v61 = vpop.f32.mrf.mxu2 }
  0xc8   : > { %v425_v62 = vadd.f32 %v794_v40, %v424_v61  ;;  %v453_v63 = vpop.f32.mrf.mxu3 }
  0xc9   : > { %v416_v0 = vpop.f32.mrf.mxu0 }
  0xca   : > { %v454_v1 = vadd.f32 %v453_v63, %v425_v62  ;;  %v417_v2 = vadd.f32 %v794_v40, %v416_v0  ;;  %v445_v3 = vpop.f32.mrf.mxu1 }
  0xcc   : > { %465 = vst.msk [vmem:[%s1028_s6 + $0x30] sm:$0xff] %vm458_vm0, %v454_v1  ;;  %v446_v4 = vadd.f32 %v445_v3, %v417_v2 }
  0xce   : > { %462 = vst.msk [vmem:[%s1028_s6 + $0x18] sm:$0xff] %vm458_vm0, %v446_v4 }
  0xcf   : > { %v426_v5 = vpop.f32.mrf.mxu2 }
  0xd0   : > { %v427_v6 = vadd.f32 %v794_v40, %v426_v5  ;;  %v455_v7 = vpop.f32.mrf.mxu3 }
  0xd2   : > { %v456_v8 = vadd.f32 %v455_v7, %v427_v6 }
  0xd4   : > { %466 = vst.msk [vmem:[%s1028_s6 + $0x38] sm:$0xff] %vm458_vm0, %v456_v8 }
  0xd5   : > { %822 = shalt.err (!%p819_p5)
}
  0xd6   : > { %s875_s29 = smov 128   ;;  %s876_s4 = smov 8  }
  0xd7   : > { %737 = dma.vmem_to_hbm [thread:$0]  (%p937_p4), %s482_s18, 1024, %s484_s19, %s468_s15, %s875_s29, %s875_s29, %s876_s4  }
  0xd8 PF: > { %p743_p6 = scmp.ge.s32.totalorder %s873_s17, 2  ;;  %s498_s5 = sand.u32 1, %s853_s12  }
  0xd9   : > { %s499_s6 = scalar_lea.sflag [#allocation3], %s498_s5 }
  0xda   : > { %p740_p7 = pnand %p743_p6, %p944_p8 }
  0xdc   : > { %p741_p9 = pneg %p740_p7 }
  0xde   : > { %848 = dma.done.wait (%p741_p9), %s499_s6, 1024  }
  0xdf   : > { %850 = vsyncadd (%p741_p9), %s499_s6, 4294966272  ;;  %s16_s17 = sadd.s32 1, %s873_s17   ;;  %s1091_s12 = smov %s857_s13 }
  0xe0   : > { %p13_p10 = scmp.ge.s32.totalorder %s16_s17, 4   ;;  %s1092_s13 = smov %s861_s14 }
  0xe1   : > { %s1093_s14 = smov %s950_s25  ;;  %s1094_s15 = smov %s869_s16 }
  0xe2   : > { %s1095_s16 = smov %s1097_s20  ;;  %15 = sbr.rel (!%p13_p10) target bundleno = 4 (0x4), region = 73 }
  0xe7   :  { %505 = vsyncpa [#allocation3], 1 }
  0xe8   :  { %507 = vsyncpa [#allocation3 + $0x1], 1 }

</bundles_post_ra>
